<compile_context>
chip_gen: v7x
topology: tpu7x:2x2x1
jax: 0.10.0
libtpu: 0.0.40
codegen_flags: <defaults>
</compile_context>

<pallas_src>
import jax
import jax.numpy as jnp
import numpy as np
from jax import lax
from jax.experimental import pallas as pl
from jax.experimental.pallas import tpu as pltpu


def _round_up(x, m):
    return ((x + m - 1) // m) * m


def _cdiv(a, b):
    return -(-a // b)


# ----------------------------- parameter setup ------------------------------
def _weight_norm(v, g):
    # PyTorch weight_norm (dim=0): w = g * v / ||v||, norm over all dims except 0.
    norm = jnp.sqrt(jnp.sum(v * v, axis=tuple(range(1, v.ndim)), keepdims=True))
    return g.reshape((-1,) + (1,) * (v.ndim - 1)) * v / norm


def init_tcn_params(key, input_size, num_channels, kernel_size, output_size):
    """Deterministic synthetic parameters (weight_norm applied analytically)."""
    params = []
    in_ch = input_size
    for i, out_ch in enumerate(num_channels):
        key, k1, k2, k3, k4, k5, k6, k7, k8 = jax.random.split(key, 9)
        v1 = 0.05 * jax.random.normal(k1, (out_ch, in_ch, kernel_size), jnp.float32)
        g1 = 0.5 + jax.random.uniform(k2, (out_ch,), jnp.float32)
        b1 = 0.02 * jax.random.normal(k3, (out_ch,), jnp.float32)
        v2 = 0.05 * jax.random.normal(k4, (out_ch, out_ch, kernel_size), jnp.float32)
        g2 = 0.5 + jax.random.uniform(k5, (out_ch,), jnp.float32)
        b2 = 0.02 * jax.random.normal(k6, (out_ch,), jnp.float32)
        blk = dict(
            w1=_weight_norm(v1, g1), b1=b1,
            w2=_weight_norm(v2, g2), b2=b2,
            dilation=2 ** i,
        )
        if in_ch != out_ch:  # downsample 1x1 conv (no weight_norm)
            blk["wd"] = 0.05 * jax.random.normal(k7, (out_ch, in_ch, 1), jnp.float32)
            blk["bd"] = 0.02 * jax.random.normal(k8, (out_ch,), jnp.float32)
        params.append(blk)
        in_ch = out_ch
    key, kl1, kl2 = jax.random.split(key, 3)
    lin_w = 0.1 * jax.random.normal(kl1, (output_size, num_channels[-1]), jnp.float32)
    lin_b = 0.02 * jax.random.normal(kl2, (output_size,), jnp.float32)
    return params, (lin_w, lin_b)


# --------------------------- parameter packing --------------------------------
def _pack_params(params, linear, kernel_size, CP):
    """Pack every matmul operand into one (S, CP, CP) bf16 weight array and one
    (S, 1, CP) f32 bias array.  Slot order per level: conv1, [downsample], conv2;
    final slot is the Linear head.  Unused rows/cols are zero-padded."""
    slabs, biases, has_down = [], [], []

    def pad_slab(w_t, b):
        cin, cout = w_t.shape
        s = jnp.zeros((CP, CP), jnp.float32).at[:cin, :cout].set(w_t)
        bb = jnp.zeros((1, CP), jnp.float32).at[0, :cout].set(b)
        return s, bb

    for blk in params:
        s, b = pad_slab(blk["w1"][:, :, kernel_size - 1].T, blk["b1"])   # last tap
        slabs.append(s); biases.append(b)
        if "wd" in blk:
            s, b = pad_slab(blk["wd"][:, :, 0].T, blk["bd"])
            slabs.append(s); biases.append(b)
            has_down.append(True)
        else:
            has_down.append(False)
        s, b = pad_slab(blk["w2"][:, :, kernel_size - 1].T, blk["b2"])
        slabs.append(s); biases.append(b)

    lin_w, lin_b = linear
    s, b = pad_slab(lin_w.T, lin_b)
    slabs.append(s); biases.append(b)

    w_pack = jnp.stack(slabs).astype(jnp.bfloat16)   # (S, CP, CP) bf16 (MXU native)
    b_pack = jnp.stack(biases)                       # (S, 1, CP)  f32 (VPU adds)
    return w_pack, b_pack, has_down


# ------------------------------ Pallas kernel --------------------------------
def _make_tcn_kernel(num_levels, has_down):
    def kernel(x_ref, w_ref, b_ref, out_ref):
        f32, bf16 = jnp.float32, jnp.bfloat16
        h = x_ref[...].astype(f32)                       # (TB, CP) activations in f32
        s = 0
        for lvl in range(num_levels):
            # conv1 (last tap only) + bias + chomp + ReLU
            z1 = jnp.dot(h.astype(bf16), w_ref[s],
                         preferred_element_type=f32) + b_ref[s]
            o = jnp.maximum(z1, 0.0)
            # TODO(synk): nn.Dropout(0.2) treated as identity (inference/eval semantics).
            s += 1
            if has_down[lvl]:
                # 1x1 downsample conv on the block input
                res = jnp.dot(h.astype(bf16), w_ref[s],
                              preferred_element_type=f32) + b_ref[s]
                s += 1
            else:
                res = h                                   # identity residual, stays f32
            # conv2 + bias + chomp + ReLU, then block residual + ReLU
            z2 = jnp.dot(o.astype(bf16), w_ref[s],
                         preferred_element_type=f32) + b_ref[s]
            s += 1
            h = jnp.maximum(jnp.maximum(z2, 0.0) + res, 0.0)
        # Linear head on the (single) last time step — lane-dense (TB, CP) f32 store.
        out_ref[...] = jnp.dot(h.astype(bf16), w_ref[s],
                               preferred_element_type=f32) + b_ref[s]
    return kernel


def tcn_forward_pallas(x, params, linear, kernel_size, output_size):
    B, Cin = x.shape
    dims = [Cin] + [blk["b1"].shape[0] for blk in params] + [output_size]
    CP = _round_up(max(dims), 128)                       # lane-padded channel width

    w_pack, b_pack, has_down = _pack_params(params, linear, kernel_size, CP)
    S = w_pack.shape[0]

    # Balanced batch tiling:
    #  * at most ~512 rows per tile,
    #  * tile row count a multiple of 16 (bf16 sublane packing),
    #  * even number of tiles when the batch is big enough so v7x's two TensorCores
    #    both get work (batch axis is marked "parallel"),
    #  * padding capped at < 16 rows per tile (vs. up to ~2x with a fixed TB).
    SUB, TB_MAX = 16, 512
    nb = max(1, _cdiv(B, TB_MAX))
    if B >= 2 * SUB:
        nb = max(2, nb + (nb & 1))
    TB = _round_up(_cdiv(B, nb), SUB)
    B_pad = nb * TB

    # bf16 activations in (the MXU consumes bf16 anyway) -> half the input DMA bytes.
    x_pad = jnp.zeros((B_pad, CP), jnp.bfloat16).at[:B, :Cin].set(x.astype(jnp.bfloat16))

    kernel = _make_tcn_kernel(len(params), has_down)

    # Honest scheduler hints for the repacked layout (weights read once, resident).
    flops = 2 * B_pad * CP * CP * S
    bytes_accessed = (B_pad * CP * 2            # bf16 activations in
                      + w_pack.size * 2         # bf16 weight slabs
                      + b_pack.size * 4         # f32 biases
                      + B_pad * CP * 4)         # f32 output slab
    vmem_need = (w_pack.size * 2 + b_pack.size * 4   # pinned slabs
                 + 2 * TB * CP * 2                   # x double buffer
                 + 2 * TB * CP * 4                   # out double buffer
                 + 6 * TB * CP * 4)                  # live f32 temporaries
    vmem_limit = int(min(64 * 2 ** 20, max(32 * 2 ** 20, 2 * vmem_need)))

    def _specs(pin_mode):
        x_spec = pl.BlockSpec((TB, CP), lambda i: (i, 0))
        if pin_mode is None:
            w_spec = pl.BlockSpec((S, CP, CP), lambda i: (0, 0, 0))
            b_spec = pl.BlockSpec((S, 1, CP), lambda i: (0, 0, 0))
        else:
            w_spec = pl.BlockSpec((S, CP, CP), lambda i: (0, 0, 0), pipeline_mode=pin_mode)
            b_spec = pl.BlockSpec((S, 1, CP), lambda i: (0, 0, 0), pipeline_mode=pin_mode)
        return [x_spec, w_spec, b_spec]

    def _run(pin_mode):
        return pl.pallas_call(
            kernel,
            out_shape=jax.ShapeDtypeStruct((B_pad, CP), jnp.float32),
            grid_spec=pltpu.PrefetchScalarGridSpec(
                num_scalar_prefetch=0,
                grid=(nb,),
                in_specs=_specs(pin_mode),
                out_specs=pl.BlockSpec((TB, CP), lambda i: (i, 0)),
            ),
            compiler_params=pltpu.CompilerParams(
                dimension_semantics=("parallel",),   # shard batch tiles across TCs
                vmem_limit_bytes=vmem_limit,
            ),
            cost_estimate=pl.CostEstimate(
                flops=flops, transcendentals=0, bytes_accessed=bytes_accessed),
        )(x_pad, w_pack, b_pack)

    try:
        # Weights/biases never change across grid steps (constant index_map); a single
        # pipeline buffer halves their resident VMEM (matters on v7x's 64 MiB once
        # channels/levels grow).  Fall back to default buffering if this jax build
        # does not accept pipeline_mode on a pallas_call BlockSpec.
        out = _run(pl.Buffered(1))
    except Exception:
        out = _run(None)

    return out[:B, :output_size]


# ----------------------- pure-JAX reference (fidelity) -----------------------
def tcn_forward_ref(x, params, linear, kernel_size):
    """Exact emulation of the PyTorch forward: NCL dilated convs, Chomp1d, ReLU,
    residual, final Linear on the last time step."""
    h = x[:, :, None]  # x.unsqueeze(1).transpose(1,2) -> (B, input_size, L=1)
    for blk in params:
        d = blk["dilation"]
        pad = (kernel_size - 1) * d

        def conv(inp, w, b, dil, p):
            y = lax.conv_general_dilated(
                inp, w, window_strides=(1,), padding=[(p, p)],
                rhs_dilation=(dil,), dimension_numbers=("NCH", "OIH", "NCH"))
            return y + b[None, :, None]

        o = conv(h, blk["w1"], blk["b1"], d, pad)
        o = jnp.maximum(o[:, :, :-pad], 0.0)            # Chomp1d + ReLU
        o = conv(o, blk["w2"], blk["b2"], d, pad)
        o = jnp.maximum(o[:, :, :-pad], 0.0)
        res = conv(h, blk["wd"], blk["bd"], 1, 0) if "wd" in blk else h
        h = jnp.maximum(o + res, 0.0)
    out = jnp.transpose(h, (0, 2, 1))                   # (B, L, C)
    lin_w, lin_b = linear
    return out[:, -1, :] @ lin_w.T + lin_b


# ---------------------------------- main -------------------------------------
if __name__ == "__main__":
    B = 8
    input_size = 16
    num_channels = (32, 32)
    kernel_size = 2
    output_size = 10
    # dropout = 0.2 in the PyTorch module -> identity here (eval semantics)

    key = jax.random.PRNGKey(0)
    key, kx = jax.random.split(key)
    x = jax.random.normal(kx, (B, input_size), jnp.float32)

    params, linear = init_tcn_params(key, input_size, num_channels,
                                     kernel_size, output_size)

    out = tcn_forward_pallas(x, params, linear, kernel_size, output_size)
    out = jax.block_until_ready(out)

    ref = tcn_forward_ref(x, params, linear, kernel_size)
    assert out.shape == (B, output_size)
    # bf16 weights/activations on the MXU -> relaxed tolerance vs. the f32 reference.
    np.testing.assert_allclose(np.asarray(out), np.asarray(ref), rtol=2e-2, atol=2e-2)
    print("KERNEL_OK")
</pallas_src>

<mosaic_0001>
module attributes {stable_mosaic.version = 11 : i64} {
  func.func @kernel(%arg0: i32, %arg1: memref<16x128xbf16, #tpu.memory_space<vmem>>, %arg2: memref<6x128x128xbf16, #tpu.memory_space<vmem>>, %arg3: memref<6x1x128xf32, #tpu.memory_space<vmem>>, %arg4: memref<16x128xf32, #tpu.memory_space<vmem>>) attributes {dimension_semantics = [#tpu.dimension_semantics<parallel>], iteration_bounds = array<i64: 1>, scalar_prefetch = 0 : i64, scratch_operands = 0 : i64, tpu.core_type = #tpu.core_type<tc>, window_params = [{transform_indices = @transform_0, window_bounds = array<i64: 16, 128>}, {pipeline_mode = #tpu.pipeline_mode<synchronous>, transform_indices = @transform_1, window_bounds = array<i64: 6, 128, 128>}, {pipeline_mode = #tpu.pipeline_mode<synchronous>, transform_indices = @transform_2, window_bounds = array<i64: 6, 1, 128>}, {transform_indices = @transform_3, window_bounds = array<i64: 16, 128>}]} {
    %c0 = arith.constant 0 : index
    %c0_0 = arith.constant 0 : index
    %0 = vector.load %arg1[%c0, %c0_0] : memref<16x128xbf16, #tpu.memory_space<vmem>>, vector<16x128xbf16>
    %1 = arith.extf %0 : vector<16x128xbf16> to vector<16x128xf32>
    %2 = arith.truncf %1 : vector<16x128xf32> to vector<16x128xbf16>
    %c0_1 = arith.constant 0 : index
    %c0_2 = arith.constant 0 : index
    %c0_3 = arith.constant 0 : index
    %3 = vector.load %arg2[%c0_1, %c0_2, %c0_3] : memref<6x128x128xbf16, #tpu.memory_space<vmem>>, vector<1x128x128xbf16>
    %4 = vector.shape_cast %3 : vector<1x128x128xbf16> to vector<128x128xbf16>
    %cst = arith.constant dense<0.000000e+00> : vector<16x128xf32>
    %5 = tpu.matmul %2, %4, %cst {dimension_numbers = #tpu.dot_dimension_numbers<[1], [0], [0], [1], [0, 0, 1, 1], [], []>} : vector<16x128xbf16>, vector<128x128xbf16>, vector<16x128xf32> -> vector<16x128xf32>
    %c0_4 = arith.constant 0 : index
    %c0_5 = arith.constant 0 : index
    %c0_6 = arith.constant 0 : index
    %6 = vector.load %arg3[%c0_4, %c0_5, %c0_6] : memref<6x1x128xf32, #tpu.memory_space<vmem>>, vector<1x1x128xf32>
    %7 = vector.shape_cast %6 : vector<1x1x128xf32> to vector<1x128xf32>
    %8 = vector.broadcast %7 : vector<1x128xf32> to vector<16x128xf32>
    %9 = arith.addf %5, %8 : vector<16x128xf32>
    %cst_7 = arith.constant 0.000000e+00 : f32
    %10 = vector.broadcast %cst_7 : f32 to vector<16x128xf32>
    %11 = arith.maximumf %9, %10 : vector<16x128xf32>
    %12 = arith.truncf %1 : vector<16x128xf32> to vector<16x128xbf16>
    %c1 = arith.constant 1 : index
    %c0_8 = arith.constant 0 : index
    %c0_9 = arith.constant 0 : index
    %13 = vector.load %arg2[%c1, %c0_8, %c0_9] : memref<6x128x128xbf16, #tpu.memory_space<vmem>>, vector<1x128x128xbf16>
    %14 = vector.shape_cast %13 : vector<1x128x128xbf16> to vector<128x128xbf16>
    %cst_10 = arith.constant dense<0.000000e+00> : vector<16x128xf32>
    %15 = tpu.matmul %12, %14, %cst_10 {dimension_numbers = #tpu.dot_dimension_numbers<[1], [0], [0], [1], [0, 0, 1, 1], [], []>} : vector<16x128xbf16>, vector<128x128xbf16>, vector<16x128xf32> -> vector<16x128xf32>
    %c1_11 = arith.constant 1 : index
    %c0_12 = arith.constant 0 : index
    %c0_13 = arith.constant 0 : index
    %16 = vector.load %arg3[%c1_11, %c0_12, %c0_13] : memref<6x1x128xf32, #tpu.memory_space<vmem>>, vector<1x1x128xf32>
    %17 = vector.shape_cast %16 : vector<1x1x128xf32> to vector<1x128xf32>
    %18 = vector.broadcast %17 : vector<1x128xf32> to vector<16x128xf32>
    %19 = arith.addf %15, %18 : vector<16x128xf32>
    %20 = arith.truncf %11 : vector<16x128xf32> to vector<16x128xbf16>
    %c2 = arith.constant 2 : index
    %c0_14 = arith.constant 0 : index
    %c0_15 = arith.constant 0 : index
    %21 = vector.load %arg2[%c2, %c0_14, %c0_15] : memref<6x128x128xbf16, #tpu.memory_space<vmem>>, vector<1x128x128xbf16>
    %22 = vector.shape_cast %21 : vector<1x128x128xbf16> to vector<128x128xbf16>
    %cst_16 = arith.constant dense<0.000000e+00> : vector<16x128xf32>
    %23 = tpu.matmul %20, %22, %cst_16 {dimension_numbers = #tpu.dot_dimension_numbers<[1], [0], [0], [1], [0, 0, 1, 1], [], []>} : vector<16x128xbf16>, vector<128x128xbf16>, vector<16x128xf32> -> vector<16x128xf32>
    %c2_17 = arith.constant 2 : index
    %c0_18 = arith.constant 0 : index
    %c0_19 = arith.constant 0 : index
    %24 = vector.load %arg3[%c2_17, %c0_18, %c0_19] : memref<6x1x128xf32, #tpu.memory_space<vmem>>, vector<1x1x128xf32>
    %25 = vector.shape_cast %24 : vector<1x1x128xf32> to vector<1x128xf32>
    %26 = vector.broadcast %25 : vector<1x128xf32> to vector<16x128xf32>
    %27 = arith.addf %23, %26 : vector<16x128xf32>
    %cst_20 = arith.constant 0.000000e+00 : f32
    %28 = vector.broadcast %cst_20 : f32 to vector<16x128xf32>
    %29 = arith.maximumf %27, %28 : vector<16x128xf32>
    %30 = arith.addf %29, %19 : vector<16x128xf32>
    %cst_21 = arith.constant 0.000000e+00 : f32
    %31 = vector.broadcast %cst_21 : f32 to vector<16x128xf32>
    %32 = arith.maximumf %30, %31 : vector<16x128xf32>
    %33 = arith.truncf %32 : vector<16x128xf32> to vector<16x128xbf16>
    %c3 = arith.constant 3 : index
    %c0_22 = arith.constant 0 : index
    %c0_23 = arith.constant 0 : index
    %34 = vector.load %arg2[%c3, %c0_22, %c0_23] : memref<6x128x128xbf16, #tpu.memory_space<vmem>>, vector<1x128x128xbf16>
    %35 = vector.shape_cast %34 : vector<1x128x128xbf16> to vector<128x128xbf16>
    %cst_24 = arith.constant dense<0.000000e+00> : vector<16x128xf32>
    %36 = tpu.matmul %33, %35, %cst_24 {dimension_numbers = #tpu.dot_dimension_numbers<[1], [0], [0], [1], [0, 0, 1, 1], [], []>} : vector<16x128xbf16>, vector<128x128xbf16>, vector<16x128xf32> -> vector<16x128xf32>
    %c3_25 = arith.constant 3 : index
    %c0_26 = arith.constant 0 : index
    %c0_27 = arith.constant 0 : index
    %37 = vector.load %arg3[%c3_25, %c0_26, %c0_27] : memref<6x1x128xf32, #tpu.memory_space<vmem>>, vector<1x1x128xf32>
    %38 = vector.shape_cast %37 : vector<1x1x128xf32> to vector<1x128xf32>
    %39 = vector.broadcast %38 : vector<1x128xf32> to vector<16x128xf32>
    %40 = arith.addf %36, %39 : vector<16x128xf32>
    %cst_28 = arith.constant 0.000000e+00 : f32
    %41 = vector.broadcast %cst_28 : f32 to vector<16x128xf32>
    %42 = arith.maximumf %40, %41 : vector<16x128xf32>
    %43 = arith.truncf %42 : vector<16x128xf32> to vector<16x128xbf16>
    %c4 = arith.constant 4 : index
    %c0_29 = arith.constant 0 : index
    %c0_30 = arith.constant 0 : index
    %44 = vector.load %arg2[%c4, %c0_29, %c0_30] : memref<6x128x128xbf16, #tpu.memory_space<vmem>>, vector<1x128x128xbf16>
    %45 = vector.shape_cast %44 : vector<1x128x128xbf16> to vector<128x128xbf16>
    %cst_31 = arith.constant dense<0.000000e+00> : vector<16x128xf32>
    %46 = tpu.matmul %43, %45, %cst_31 {dimension_numbers = #tpu.dot_dimension_numbers<[1], [0], [0], [1], [0, 0, 1, 1], [], []>} : vector<16x128xbf16>, vector<128x128xbf16>, vector<16x128xf32> -> vector<16x128xf32>
    %c4_32 = arith.constant 4 : index
    %c0_33 = arith.constant 0 : index
    %c0_34 = arith.constant 0 : index
    %47 = vector.load %arg3[%c4_32, %c0_33, %c0_34] : memref<6x1x128xf32, #tpu.memory_space<vmem>>, vector<1x1x128xf32>
    %48 = vector.shape_cast %47 : vector<1x1x128xf32> to vector<1x128xf32>
    %49 = vector.broadcast %48 : vector<1x128xf32> to vector<16x128xf32>
    %50 = arith.addf %46, %49 : vector<16x128xf32>
    %cst_35 = arith.constant 0.000000e+00 : f32
    %51 = vector.broadcast %cst_35 : f32 to vector<16x128xf32>
    %52 = arith.maximumf %50, %51 : vector<16x128xf32>
    %53 = arith.addf %52, %32 : vector<16x128xf32>
    %cst_36 = arith.constant 0.000000e+00 : f32
    %54 = vector.broadcast %cst_36 : f32 to vector<16x128xf32>
    %55 = arith.maximumf %53, %54 : vector<16x128xf32>
    %56 = arith.truncf %55 : vector<16x128xf32> to vector<16x128xbf16>
    %c5 = arith.constant 5 : index
    %c0_37 = arith.constant 0 : index
    %c0_38 = arith.constant 0 : index
    %57 = vector.load %arg2[%c5, %c0_37, %c0_38] : memref<6x128x128xbf16, #tpu.memory_space<vmem>>, vector<1x128x128xbf16>
    %58 = vector.shape_cast %57 : vector<1x128x128xbf16> to vector<128x128xbf16>
    %cst_39 = arith.constant dense<0.000000e+00> : vector<16x128xf32>
    %59 = tpu.matmul %56, %58, %cst_39 {dimension_numbers = #tpu.dot_dimension_numbers<[1], [0], [0], [1], [0, 0, 1, 1], [], []>} : vector<16x128xbf16>, vector<128x128xbf16>, vector<16x128xf32> -> vector<16x128xf32>
    %c5_40 = arith.constant 5 : index
    %c0_41 = arith.constant 0 : index
    %c0_42 = arith.constant 0 : index
    %60 = vector.load %arg3[%c5_40, %c0_41, %c0_42] : memref<6x1x128xf32, #tpu.memory_space<vmem>>, vector<1x1x128xf32>
    %61 = vector.shape_cast %60 : vector<1x1x128xf32> to vector<1x128xf32>
    %62 = vector.broadcast %61 : vector<1x128xf32> to vector<16x128xf32>
    %63 = arith.addf %59, %62 : vector<16x128xf32>
    %c0_43 = arith.constant 0 : index
    %c0_44 = arith.constant 0 : index
    %64 = vector.load %arg4[%c0_43, %c0_44] : memref<16x128xf32, #tpu.memory_space<vmem>>, vector<16x128xf32>
    tpu.vector_store %arg4[%c0_43, %c0_44], %63 {strides = array<i32>} : memref<16x128xf32, #tpu.memory_space<vmem>>, vector<16x128xf32>,
    return
  }
  func.func @transform_0(%arg0: i32) -> (i32, i32) {
    %c0_i32 = arith.constant 0 : i32
    %c0_i32_0 = arith.constant 0 : i32
    return %arg0, %c0_i32 : i32, i32
  }
  func.func @transform_1(%arg0: i32) -> (i32, i32, i32) {
    %c0_i32 = arith.constant 0 : i32
    %c0_i32_0 = arith.constant 0 : i32
    %c0_i32_1 = arith.constant 0 : i32
    %c0_i32_2 = arith.constant 0 : i32
    return %c0_i32, %c0_i32_0, %c0_i32_1 : i32, i32, i32
  }
  func.func @transform_2(%arg0: i32) -> (i32, i32, i32) {
    %c0_i32 = arith.constant 0 : i32
    %c0_i32_0 = arith.constant 0 : i32
    %c0_i32_1 = arith.constant 0 : i32
    %c0_i32_2 = arith.constant 0 : i32
    return %c0_i32, %c0_i32_0, %c0_i32_1 : i32, i32, i32
  }
  func.func @transform_3(%arg0: i32) -> (i32, i32) {
    %c0_i32 = arith.constant 0 : i32
    %c0_i32_0 = arith.constant 0 : i32
    return %arg0, %c0_i32 : i32, i32
  }
}

module attributes {stable_mosaic.version = 11 : i64} {
  func.func @kernel(%arg0: i32, %arg1: memref<16x128xbf16, #tpu.memory_space<vmem>>, %arg2: memref<6x128x128xbf16, #tpu.memory_space<vmem>>, %arg3: memref<6x1x128xf32, #tpu.memory_space<vmem>>, %arg4: memref<16x128xf32, #tpu.memory_space<vmem>>) attributes {dimension_semantics = [#tpu.dimension_semantics<parallel>], iteration_bounds = array<i64: 1>, scalar_prefetch = 0 : i64, scratch_operands = 0 : i64, tpu.core_type = #tpu.core_type<tc>, window_params = [{transform_indices = @transform_0, window_bounds = array<i64: 16, 128>}, {pipeline_mode = #tpu.pipeline_mode<synchronous>, transform_indices = @transform_1, window_bounds = array<i64: 6, 128, 128>}, {pipeline_mode = #tpu.pipeline_mode<synchronous>, transform_indices = @transform_2, window_bounds = array<i64: 6, 1, 128>}, {transform_indices = @transform_3, window_bounds = array<i64: 16, 128>}]} {
    %c0 = arith.constant 0 : index
    %c0_0 = arith.constant 0 : index
    %0 = vector.load %arg1[%c0, %c0_0] : memref<16x128xbf16, #tpu.memory_space<vmem>>, vector<16x128xbf16>
    %1 = arith.extf %0 : vector<16x128xbf16> to vector<16x128xf32>
    %2 = arith.truncf %1 : vector<16x128xf32> to vector<16x128xbf16>
    %c0_1 = arith.constant 0 : index
    %c0_2 = arith.constant 0 : index
    %c0_3 = arith.constant 0 : index
    %3 = vector.load %arg2[%c0_1, %c0_2, %c0_3] : memref<6x128x128xbf16, #tpu.memory_space<vmem>>, vector<1x128x128xbf16>
    %4 = vector.shape_cast %3 : vector<1x128x128xbf16> to vector<128x128xbf16>
    %cst = arith.constant dense<0.000000e+00> : vector<16x128xf32>
    %5 = tpu.matmul %2, %4, %cst {dimension_numbers = #tpu.dot_dimension_numbers<[1], [0], [0], [1], [0, 0, 1, 1], [], []>} : vector<16x128xbf16>, vector<128x128xbf16>, vector<16x128xf32> -> vector<16x128xf32>
    %c0_4 = arith.constant 0 : index
    %c0_5 = arith.constant 0 : index
    %c0_6 = arith.constant 0 : index
    %6 = vector.load %arg3[%c0_4, %c0_5, %c0_6] : memref<6x1x128xf32, #tpu.memory_space<vmem>>, vector<1x1x128xf32>
    %7 = vector.shape_cast %6 : vector<1x1x128xf32> to vector<1x128xf32>
    %8 = vector.broadcast %7 : vector<1x128xf32> to vector<16x128xf32>
    %9 = arith.addf %5, %8 : vector<16x128xf32>
    %cst_7 = arith.constant 0.000000e+00 : f32
    %10 = vector.broadcast %cst_7 : f32 to vector<16x128xf32>
    %11 = arith.maximumf %9, %10 : vector<16x128xf32>
    %12 = arith.truncf %1 : vector<16x128xf32> to vector<16x128xbf16>
    %c1 = arith.constant 1 : index
    %c0_8 = arith.constant 0 : index
    %c0_9 = arith.constant 0 : index
    %13 = vector.load %arg2[%c1, %c0_8, %c0_9] : memref<6x128x128xbf16, #tpu.memory_space<vmem>>, vector<1x128x128xbf16>
    %14 = vector.shape_cast %13 : vector<1x128x128xbf16> to vector<128x128xbf16>
    %cst_10 = arith.constant dense<0.000000e+00> : vector<16x128xf32>
    %15 = tpu.matmul %12, %14, %cst_10 {dimension_numbers = #tpu.dot_dimension_numbers<[1], [0], [0], [1], [0, 0, 1, 1], [], []>} : vector<16x128xbf16>, vector<128x128xbf16>, vector<16x128xf32> -> vector<16x128xf32>
    %c1_11 = arith.constant 1 : index
    %c0_12 = arith.constant 0 : index
    %c0_13 = arith.constant 0 : index
    %16 = vector.load %arg3[%c1_11, %c0_12, %c0_13] : memref<6x1x128xf32, #tpu.memory_space<vmem>>, vector<1x1x128xf32>
    %17 = vector.shape_cast %16 : vector<1x1x128xf32> to vector<1x128xf32>
    %18 = vector.broadcast %17 : vector<1x128xf32> to vector<16x128xf32>
    %19 = arith.addf %15, %18 : vector<16x128xf32>
    %20 = arith.truncf %11 : vector<16x128xf32> to vector<16x128xbf16>
    %c2 = arith.constant 2 : index
    %c0_14 = arith.constant 0 : index
    %c0_15 = arith.constant 0 : index
    %21 = vector.load %arg2[%c2, %c0_14, %c0_15] : memref<6x128x128xbf16, #tpu.memory_space<vmem>>, vector<1x128x128xbf16>
    %22 = vector.shape_cast %21 : vector<1x128x128xbf16> to vector<128x128xbf16>
    %cst_16 = arith.constant dense<0.000000e+00> : vector<16x128xf32>
    %23 = tpu.matmul %20, %22, %cst_16 {dimension_numbers = #tpu.dot_dimension_numbers<[1], [0], [0], [1], [0, 0, 1, 1], [], []>} : vector<16x128xbf16>, vector<128x128xbf16>, vector<16x128xf32> -> vector<16x128xf32>
    %c2_17 = arith.constant 2 : index
    %c0_18 = arith.constant 0 : index
    %c0_19 = arith.constant 0 : index
    %24 = vector.load %arg3[%c2_17, %c0_18, %c0_19] : memref<6x1x128xf32, #tpu.memory_space<vmem>>, vector<1x1x128xf32>
    %25 = vector.shape_cast %24 : vector<1x1x128xf32> to vector<1x128xf32>
    %26 = vector.broadcast %25 : vector<1x128xf32> to vector<16x128xf32>
    %27 = arith.addf %23, %26 : vector<16x128xf32>
    %cst_20 = arith.constant 0.000000e+00 : f32
    %28 = vector.broadcast %cst_20 : f32 to vector<16x128xf32>
    %29 = arith.maximumf %27, %28 : vector<16x128xf32>
    %30 = arith.addf %29, %19 : vector<16x128xf32>
    %cst_21 = arith.constant 0.000000e+00 : f32
    %31 = vector.broadcast %cst_21 : f32 to vector<16x128xf32>
    %32 = arith.maximumf %30, %31 : vector<16x128xf32>
    %33 = arith.truncf %32 : vector<16x128xf32> to vector<16x128xbf16>
    %c3 = arith.constant 3 : index
    %c0_22 = arith.constant 0 : index
    %c0_23 = arith.constant 0 : index
    %34 = vector.load %arg2[%c3, %c0_22, %c0_23] : memref<6x128x128xbf16, #tpu.memory_space<vmem>>, vector<1x128x128xbf16>
    %35 = vector.shape_cast %34 : vector<1x128x128xbf16> to vector<128x128xbf16>
    %cst_24 = arith.constant dense<0.000000e+00> : vector<16x128xf32>
    %36 = tpu.matmul %33, %35, %cst_24 {dimension_numbers = #tpu.dot_dimension_numbers<[1], [0], [0], [1], [0, 0, 1, 1], [], []>} : vector<16x128xbf16>, vector<128x128xbf16>, vector<16x128xf32> -> vector<16x128xf32>
    %c3_25 = arith.constant 3 : index
    %c0_26 = arith.constant 0 : index
    %c0_27 = arith.constant 0 : index
    %37 = vector.load %arg3[%c3_25, %c0_26, %c0_27] : memref<6x1x128xf32, #tpu.memory_space<vmem>>, vector<1x1x128xf32>
    %38 = vector.shape_cast %37 : vector<1x1x128xf32> to vector<1x128xf32>
    %39 = vector.broadcast %38 : vector<1x128xf32> to vector<16x128xf32>
    %40 = arith.addf %36, %39 : vector<16x128xf32>
    %cst_28 = arith.constant 0.000000e+00 : f32
    %41 = vector.broadcast %cst_28 : f32 to vector<16x128xf32>
    %42 = arith.maximumf %40, %41 : vector<16x128xf32>
    %43 = arith.truncf %42 : vector<16x128xf32> to vector<16x128xbf16>
    %c4 = arith.constant 4 : index
    %c0_29 = arith.constant 0 : index
    %c0_30 = arith.constant 0 : index
    %44 = vector.load %arg2[%c4, %c0_29, %c0_30] : memref<6x128x128xbf16, #tpu.memory_space<vmem>>, vector<1x128x128xbf16>
    %45 = vector.shape_cast %44 : vector<1x128x128xbf16> to vector<128x128xbf16>
    %cst_31 = arith.constant dense<0.000000e+00> : vector<16x128xf32>
    %46 = tpu.matmul %43, %45, %cst_31 {dimension_numbers = #tpu.dot_dimension_numbers<[1], [0], [0], [1], [0, 0, 1, 1], [], []>} : vector<16x128xbf16>, vector<128x128xbf16>, vector<16x128xf32> -> vector<16x128xf32>
    %c4_32 = arith.constant 4 : index
    %c0_33 = arith.constant 0 : index
    %c0_34 = arith.constant 0 : index
    %47 = vector.load %arg3[%c4_32, %c0_33, %c0_34] : memref<6x1x128xf32, #tpu.memory_space<vmem>>, vector<1x1x128xf32>
    %48 = vector.shape_cast %47 : vector<1x1x128xf32> to vector<1x128xf32>
    %49 = vector.broadcast %48 : vector<1x128xf32> to vector<16x128xf32>
    %50 = arith.addf %46, %49 : vector<16x128xf32>
    %cst_35 = arith.constant 0.000000e+00 : f32
    %51 = vector.broadcast %cst_35 : f32 to vector<16x128xf32>
    %52 = arith.maximumf %50, %51 : vector<16x128xf32>
    %53 = arith.addf %52, %32 : vector<16x128xf32>
    %cst_36 = arith.constant 0.000000e+00 : f32
    %54 = vector.broadcast %cst_36 : f32 to vector<16x128xf32>
    %55 = arith.maximumf %53, %54 : vector<16x128xf32>
    %56 = arith.truncf %55 : vector<16x128xf32> to vector<16x128xbf16>
    %c5 = arith.constant 5 : index
    %c0_37 = arith.constant 0 : index
    %c0_38 = arith.constant 0 : index
    %57 = vector.load %arg2[%c5, %c0_37, %c0_38] : memref<6x128x128xbf16, #tpu.memory_space<vmem>>, vector<1x128x128xbf16>
    %58 = vector.shape_cast %57 : vector<1x128x128xbf16> to vector<128x128xbf16>
    %cst_39 = arith.constant dense<0.000000e+00> : vector<16x128xf32>
    %59 = tpu.matmul %56, %58, %cst_39 {dimension_numbers = #tpu.dot_dimension_numbers<[1], [0], [0], [1], [0, 0, 1, 1], [], []>} : vector<16x128xbf16>, vector<128x128xbf16>, vector<16x128xf32> -> vector<16x128xf32>
    %c5_40 = arith.constant 5 : index
    %c0_41 = arith.constant 0 : index
    %c0_42 = arith.constant 0 : index
    %60 = vector.load %arg3[%c5_40, %c0_41, %c0_42] : memref<6x1x128xf32, #tpu.memory_space<vmem>>, vector<1x1x128xf32>
    %61 = vector.shape_cast %60 : vector<1x1x128xf32> to vector<1x128xf32>
    %62 = vector.broadcast %61 : vector<1x128xf32> to vector<16x128xf32>
    %63 = arith.addf %59, %62 : vector<16x128xf32>
    %c0_43 = arith.constant 0 : index
    %c0_44 = arith.constant 0 : index
    %64 = vector.load %arg4[%c0_43, %c0_44] : memref<16x128xf32, #tpu.memory_space<vmem>>, vector<16x128xf32>
    tpu.vector_store %arg4[%c0_43, %c0_44], %63 {strides = array<i32>} : memref<16x128xf32, #tpu.memory_space<vmem>>, vector<16x128xf32>,
    return
  }
  func.func @transform_0(%arg0: i32) -> (i32, i32) {
    %c0_i32 = arith.constant 0 : i32
    %c0_i32_0 = arith.constant 0 : i32
    return %arg0, %c0_i32 : i32, i32
  }
  func.func @transform_1(%arg0: i32) -> (i32, i32, i32) {
    %c0_i32 = arith.constant 0 : i32
    %c0_i32_0 = arith.constant 0 : i32
    %c0_i32_1 = arith.constant 0 : i32
    %c0_i32_2 = arith.constant 0 : i32
    return %c0_i32, %c0_i32_0, %c0_i32_1 : i32, i32, i32
  }
  func.func @transform_2(%arg0: i32) -> (i32, i32, i32) {
    %c0_i32 = arith.constant 0 : i32
    %c0_i32_0 = arith.constant 0 : i32
    %c0_i32_1 = arith.constant 0 : i32
    %c0_i32_2 = arith.constant 0 : i32
    return %c0_i32, %c0_i32_0, %c0_i32_1 : i32, i32, i32
  }
  func.func @transform_3(%arg0: i32) -> (i32, i32) {
    %c0_i32 = arith.constant 0 : i32
    %c0_i32_0 = arith.constant 0 : i32
    return %arg0, %c0_i32 : i32, i32
  }
}

</mosaic_0001>

<bundles_post_ra>
// kernel: tpu_custom_call.1
= control target key start
LH: loop header
LB: loop body
LE: loop exit
PB: predicated region body
PF: predicated region fallthrough
CT: control target
= control target key end

     0   :  { %8 = vsyncpa [#allocation3], 0  ;;  %s1281_s0 = inlined_call_operand.hbm [shape: bf16[16,128], index: 0, kind: input, shape index: {}]   ;;  %s1282_s1 = inlined_call_operand.hbm [shape: bf16[6,128,128], index: 1, kind: input, shape index: {}]   ;;  %s1283_s2 = inlined_call_operand.vmem [shape: f32[6,1,128], index: 2, kind: input, shape index: {}]   ;;  %s1284_s3 = inlined_call_operand.hbm [shape: f32[16,128], index: 3, kind: output, shape index: {}]  }
   0x1   :  { %9 = vsyncpa [#allocation6], 0 }
   0x2   :  { %10 = vsyncpa [#allocation4], 0  ;;  %s1138_s12 = smov [#allocation2]   ;;  %s1066_s16 = scalar_lea.hbm %s1281_s0, 128 }
   0x3   :  { %s16_s13 = sshll.u32 %s1138_s12, 4  ;;  %p1067_p0 = scmp.ne.s32.totalorder %s1281_s0, %s1066_s16  ;;  %s17_s13 = int_to_ptr.vmem [resolvable:$true] %s16_s13 }
   0x4   :  { %p1070_p1 = scmp.lt.u32.totalorder %s1066_s16, %s1281_s0 }
   0x6   :  { %p1072_p2 = pnand %p1070_p1, %p1067_p0 }
   0x8   :  { %1075 = shalt.err (!%p1072_p2)
}
   0x9   :  { %s1076_s21 = scalar_lea.vmem %s17_s13, 128  ;;  %p1081_p4 = scmp.lt.s32.totalorder %s17_s13, %s17_s13 }
   0xa   :  { %p1077_p3 = scmp.ne.s32.totalorder %s17_s13, %s1076_s21  ;;  %p1082_p5 = scmp.lt.s32.totalorder %s1076_s21, %s1076_s21 }
   0xc   :  { %p1083_p6 = por %p1082_p5, %p1081_p4 }
   0xe   :  { %p1084_p7 = pnand %p1083_p6, %p1077_p3 }
  0x10   :  { %1087 = shalt.err (!%p1084_p7)
}
  0x11   :  { %s1139_s22 = smov 64   ;;  %s1140_s23 = smov 4  }
  0x12   :  { %22 = dma.hbm_to_vmem [thread:$0]  %s1281_s0, 128, %s17_s13, [#allocation3], %s1139_s22, %s1139_s22, %s1140_s23  }
  0x13   :  { %s1141_s26 = smov [#allocation5]   ;;  %s1088_s30 = scalar_lea.hbm %s1282_s1, 6144 }
  0x14   :  { %s28_s27 = sshll.u32 %s1141_s26, 4  ;;  %p1089_p8 = scmp.ne.s32.totalorder %s1282_s1, %s1088_s30  ;;  %s29_s27 = int_to_ptr.vmem [resolvable:$true] %s28_s27 }
  0x15   :  { %p1092_p9 = scmp.lt.u32.totalorder %s1088_s30, %s1282_s1 }
  0x17   :  { %p1094_p10 = pnand %p1092_p9, %p1089_p8 }
  0x19   :  { %1097 = shalt.err (!%p1094_p10)
}
  0x1a   :  { %s1098_s8 = scalar_lea.vmem %s29_s27, 6144  ;;  %p1103_p12 = scmp.lt.s32.totalorder %s29_s27, %s29_s27 }
  0x1b   :  { %p1099_p11 = scmp.ne.s32.totalorder %s29_s27, %s1098_s8  ;;  %p1104_p13 = scmp.lt.s32.totalorder %s1098_s8, %s1098_s8 }
  0x1d   :  { %p1105_p0 = por %p1104_p13, %p1103_p12 }
  0x1f   :  { %p1106_p1 = pnand %p1105_p0, %p1099_p11 }
  0x21   :  { %1109 = shalt.err (!%p1106_p1)
}
  0x22   :  { %34 = dma.hbm_to_vmem [thread:$0]  %s1282_s1, 6144, %s29_s27, [#allocation6], %s1139_s22, %s1139_s22, %s1140_s23  }
  0x23   :  { %1132 = dma.done.wait [#allocation3], 128  }
  0x24   :  { %1133 = vsyncadd [#allocation3], 4294967168 }
  0x25   :  { %1134 = dma.done.wait [#allocation6], 6144  }
  0x26   :  { %1135 = vsyncadd [#allocation6], 4294961152  ;;  %v1142_v0 = vmov 0.0   ;;  %vm1143_vm0 = vmmov 0   ;;  %v1017_v1 = vld [vmem:[#allocation5] sm:$0xff]   ;;  %v1018_v2 = vld [vmem:[#allocation5 + $0x8] sm:$0xff]  }
  0x27   :  { %888 = vmatprep.subr.bf16.mxu0 %v1142_v0  ;;  %904 = vmatprep.mubr.msk.bf16.mxu0 %vm1143_vm0, %v1142_v0  ;;  %v1019_v3 = vld [vmem:[#allocation5 + $0x10] sm:$0xff]   ;;  %v1026_v4 = vld [vmem:[#allocation5 + $0x40] sm:$0xff]   ;;  %v1020_v5 = vld [vmem:[#allocation5 + $0x18] sm:$0xff]   ;;  %s1144_s21 = smov [#allocation7]  }
  0x28   :  { %908 = vmatprep.subr.bf16.mxu1 %v1142_v0  ;;  %924 = vmatprep.mubr.msk.bf16.mxu1 %vm1143_vm0, %v1142_v0  ;;  %v1028_v6 = vld [vmem:[#allocation5 + $0x48] sm:$0xff]   ;;  %v1021_v7 = vld [vmem:[#allocation5 + $0x20] sm:$0xff]   ;;  %v1030_v8 = vld [vmem:[#allocation5 + $0x50] sm:$0xff]   ;;  %s761_s22 = sshll.u32 %s1144_s21, 4  ;;  %s762_s22 = int_to_ptr.vmem [resolvable:$true] %s761_s22 }
  0x29   :  { %889 = vmatpush3.bf16.msra.mxu0 %v1017_v1  ;;  %909 = vmatpush3.bf16.msra.mxu1 %v1026_v4  ;;  %v1022_v9 = vld [vmem:[#allocation5 + $0x28] sm:$0xff]   ;;  %v1032_v10 = vld [vmem:[#allocation5 + $0x58] sm:$0xff]   ;;  %v1023_v11 = vld [vmem:[#allocation5 + $0x30] sm:$0xff]   ;;  %s1110_s23 = scalar_lea.vmem %s762_s22, 256  ;;  %p1115_p3 = scmp.lt.s32.totalorder %s762_s22, %s762_s22 }
  0x2a   :  { %890 = vmatprep.subr.bf16.mxu0 %v1142_v0  ;;  %910 = vmatprep.subr.bf16.mxu1 %v1142_v0  ;;  %v1034_v12 = vld [vmem:[#allocation5 + $0x60] sm:$0xff]   ;;  %v1024_v13 = vld [vmem:[#allocation5 + $0x38] sm:$0xff]   ;;  %v1036_v14 = vld [vmem:[#allocation5 + $0x68] sm:$0xff]   ;;  %p1111_p2 = scmp.ne.s32.totalorder %s762_s22, %s1110_s23  ;;  %p1116_p4 = scmp.lt.s32.totalorder %s1110_s23, %s1110_s23 }
  0x2b   :  { %v1025_v15 = vld [vmem:[#allocation2] sm:$0xff]   ;;  %v1027_v16 = vld [vmem:[#allocation5 + $0x80] sm:$0xff]   ;;  %v1029_v17 = vld [vmem:[#allocation5 + $0x88] sm:$0xff]  }
  0x2c   :  { %v1031_v18 = vld [vmem:[#allocation5 + $0x90] sm:$0xff]   ;;  %v1033_v19 = vld [vmem:[#allocation5 + $0x98] sm:$0xff]   ;;  %v1035_v20 = vld [vmem:[#allocation5 + $0xa0] sm:$0xff]   ;;  %p1117_p5 = por %p1116_p4, %p1115_p3 }
  0x2d   :  { %891 = vmatpush3.bf16.msra.mxu0 %v1018_v2  ;;  %911 = vmatpush3.bf16.msra.mxu1 %v1028_v6  ;;  %v1037_v21 = vld [vmem:[#allocation5 + $0xa8] sm:$0xff]   ;;  %v1038_v22 = vld [vmem:[#allocation5 + $0x70] sm:$0xff]   ;;  %v1040_v24 = vld [vmem:[#allocation5 + $0x78] sm:$0xff]  }
  0x2e   :  { %892 = vmatprep.subr.bf16.mxu0 %v1142_v0  ;;  %912 = vmatprep.subr.bf16.mxu1 %v1142_v0  ;;  %v1039_v23 = vld [vmem:[#allocation5 + $0xb0] sm:$0xff]   ;;  %v1041_v25 = vld [vmem:[#allocation5 + $0xb8] sm:$0xff]   ;;  %v1042_v26 = vld [vmem:[#allocation5 + $0xc0] sm:$0xff]   ;;  %p1118_p6 = pnand %p1117_p5, %p1111_p2 }
  0x2f   :  { %v1043_v27 = vld [vmem:[#allocation5 + $0xc8] sm:$0xff]   ;;  %v1044_v28 = vld [vmem:[#allocation5 + $0xd0] sm:$0xff]   ;;  %v1045_v29 = vld [vmem:[#allocation5 + $0xd8] sm:$0xff]  }
  0x30   :  { %v1046_v30 = vld [vmem:[#allocation5 + $0xe0] sm:$0xff]   ;;  %v774_v31 = vld [vmem:[%s1283_s2] ss:$0 sm:$0xff]  ;;  %v1047_v43 = vld [vmem:[#allocation5 + $0xe8] sm:$0xff]  }
  0x31   :  { %893 = vmatpush3.bf16.msra.mxu0 %v1019_v3  ;;  %913 = vmatpush3.bf16.msra.mxu1 %v1030_v8  ;;  %v1048_v46 = vld [vmem:[#allocation5 + $0xf0] sm:$0xff]   ;;  %v1049_v47 = vld [vmem:[#allocation5 + $0xf8] sm:$0xff]   ;;  %v1050_v48 = vld [vmem:[#allocation5 + $0x100] sm:$0xff]  }
  0x32   :  { %894 = vmatprep.subr.bf16.mxu0 %v1142_v0  ;;  %914 = vmatprep.subr.bf16.mxu1 %v1142_v0  ;;  %v1051_v49 = vld [vmem:[#allocation5 + $0x108] sm:$0xff]   ;;  %v1052_v50 = vld [vmem:[#allocation5 + $0x110] sm:$0xff]   ;;  %v1053_v51 = vld [vmem:[#allocation5 + $0x118] sm:$0xff]  }
  0x33   :  { %v1054_v52 = vld [vmem:[#allocation5 + $0x120] sm:$0xff]   ;;  %v1055_v53 = vld [vmem:[#allocation5 + $0x128] sm:$0xff]   ;;  %v785_v54 = vld [vmem:[%s1283_s2 + $0x1] ss:$0 sm:$0xff] }
  0x34   :  { %v795_v55 = vld [vmem:[%s1283_s2 + $0x2] ss:$0 sm:$0xff]  ;;  %v1056_v8 = vld [vmem:[#allocation5 + $0x130] sm:$0xff]  }
  0x35   :  { %895 = vmatpush3.bf16.msra.mxu0 %v1020_v5  ;;  %915 = vmatpush3.bf16.msra.mxu1 %v1032_v10  ;;  %v1058_v10 = vld [vmem:[#allocation5 + $0x140] sm:$0xff]  }
  0x36   :  { %896 = vmatprep.subr.bf16.mxu0 %v1142_v0  ;;  %916 = vmatprep.subr.bf16.mxu1 %v1142_v0 }
  0x39   :  { %897 = vmatpush3.bf16.msra.mxu0 %v1021_v7  ;;  %917 = vmatpush3.bf16.msra.mxu1 %v1034_v12  ;;  %v1060_v12 = vld [vmem:[#allocation5 + $0x150] sm:$0xff]  }
  0x3a   :  { %898 = vmatprep.subr.bf16.mxu0 %v1142_v0  ;;  %918 = vmatprep.subr.bf16.mxu1 %v1142_v0 }
  0x3d   :  { %899 = vmatpush3.bf16.msra.mxu0 %v1022_v9  ;;  %919 = vmatpush3.bf16.msra.mxu1 %v1036_v14  ;;  %v1057_v9 = vld [vmem:[#allocation5 + $0x138] sm:$0xff]   ;;  %v1062_v14 = vld [vmem:[#allocation5 + $0x160] sm:$0xff]  }
  0x3e   :  { %900 = vmatprep.subr.bf16.mxu0 %v1142_v0  ;;  %920 = vmatprep.subr.bf16.mxu1 %v1142_v0 }
  0x41   :  { %901 = vmatpush3.bf16.msra.mxu0 %v1023_v11  ;;  %921 = vmatpush3.bf16.msra.mxu1 %v1038_v22  ;;  %v1059_v11 = vld [vmem:[#allocation5 + $0x148] sm:$0xff]  }
  0x42   :  { %902 = vmatprep.subr.bf16.mxu0 %v1142_v0  ;;  %922 = vmatprep.subr.bf16.mxu1 %v1142_v0 }
  0x45   :  { %903 = vmatpush3.bf16.msra.mxu0 %v1024_v13  ;;  %923 = vmatpush3.bf16.msra.mxu1 %v1040_v24  ;;  %v1061_v13 = vld [vmem:[#allocation5 + $0x158] sm:$0xff]  }
  0x46   :  { %928 = vmatprep.subr.bf16.mxu0 %v1142_v0  ;;  %948 = vmatprep.subr.bf16.mxu1 %v1142_v0 }
  0x48   :  { %905 = vmatmul.mubr.bf16.vlgmr.msra.gmra.mrb[0].mxu0 %v1025_v15  ;;  %925 = vmatmul.mubr.bf16.vlgmr.msra.gmra.mrb[0].mxu1 %v1025_v15  ;;  %v805_v15 = vld [vmem:[%s1283_s2 + $0x3] ss:$0 sm:$0xff] }
  0x49   :  { %929 = vmatpush3.bf16.msra.mxu0 %v1027_v16  ;;  %944 = vmatprep.mubr.msk.bf16.mxu0 %vm1143_vm0, %v1142_v0 }
  0x4a   :  { %930 = vmatprep.subr.bf16.mxu0 %v1142_v0  ;;  %964 = vmatprep.mubr.msk.bf16.mxu1 %vm1143_vm0, %v1142_v0 }
  0x4b   :  { %949 = vmatpush3.bf16.msra.mxu1 %v1042_v26  ;;  %v1064_v26 = vld [vmem:[#allocation5 + $0x170] sm:$0xff]  }
  0x4c   :  { %950 = vmatprep.subr.bf16.mxu1 %v1142_v0 }
  0x4d   :  { %931 = vmatpush3.bf16.msra.mxu0 %v1029_v17 }
  0x4e   :  { %932 = vmatprep.subr.bf16.mxu0 %v1142_v0 }
  0x4f   :  { %951 = vmatpush3.bf16.msra.mxu1 %v1043_v27  ;;  %v1065_v27 = vld [vmem:[#allocation5 + $0x178] sm:$0xff]  }
  0x50   :  { %952 = vmatprep.subr.bf16.mxu1 %v1142_v0 }
  0x51   :  { %933 = vmatpush3.bf16.msra.mxu0 %v1031_v18 }
  0x52   :  { %934 = vmatprep.subr.bf16.mxu0 %v1142_v0 }
  0x53   :  { %953 = vmatpush3.bf16.msra.mxu1 %v1044_v28  ;;  %v815_v28 = vld [vmem:[%s1283_s2 + $0x4] ss:$0 sm:$0xff] }
  0x54   :  { %954 = vmatprep.subr.bf16.mxu1 %v1142_v0 }
  0x55   :  { %935 = vmatpush3.bf16.msra.mxu0 %v1033_v19 }
  0x56   :  { %936 = vmatprep.subr.bf16.mxu0 %v1142_v0 }
  0x57   :  { %955 = vmatpush3.bf16.msra.mxu1 %v1045_v29 }
  0x58   :  { %956 = vmatprep.subr.bf16.mxu1 %v1142_v0 }
  0x59   :  { %937 = vmatpush3.bf16.msra.mxu0 %v1035_v20 }
  0x5a   :  { %938 = vmatprep.subr.bf16.mxu0 %v1142_v0 }
  0x5b   :  { %957 = vmatpush3.bf16.msra.mxu1 %v1046_v30 }
  0x5c   :  { %958 = vmatprep.subr.bf16.mxu1 %v1142_v0 }
  0x5d   :  { %939 = vmatpush3.bf16.msra.mxu0 %v1037_v21 }
  0x5e   :  { %940 = vmatprep.subr.bf16.mxu0 %v1142_v0 }
  0x5f   :  { %959 = vmatpush3.bf16.msra.mxu1 %v1047_v43 }
  0x60   :  { %960 = vmatprep.subr.bf16.mxu1 %v1142_v0 }
  0x61   :  { %941 = vmatpush3.bf16.msra.mxu0 %v1039_v23 }
  0x62   :  { %942 = vmatprep.subr.bf16.mxu0 %v1142_v0 }
  0x63   :  { %961 = vmatpush3.bf16.msra.mxu1 %v1048_v46 }
  0x64   :  { %962 = vmatprep.subr.bf16.mxu1 %v1142_v0 }
  0x65   :  { %943 = vmatpush3.bf16.msra.mxu0 %v1041_v25  ;;  %v1063_v25 = vld [vmem:[#allocation5 + $0x168] sm:$0xff]  }
  0x66   :  { %968 = vmatprep.subr.bf16.mxu0 %v1142_v0 }
  0x67   :  { %963 = vmatpush3.bf16.msra.mxu1 %v1049_v47 }
  0x68   :  { %988 = vmatprep.subr.bf16.mxu1 %v1142_v0 }
 0x11b   :  { %v157_v32 = vpop.f32.mrb[0].mxu0  ;;  %v273_v41 = vpop.f32.mrb[0].mxu1 }
 0x11c   :  { %v158_v33 = vadd.f32 %v774_v31, %v157_v32  ;;  %v906_v34 = vpop.f32.mrb[1].mxu0  ;;  %v926_v42 = vpop.f32.mrb[1].mxu1  ;;  %v274_v57 = vadd.f32 %v785_v54, %v273_v41 }
 0x11d   :  { %v160_v35 = vpop.f32.mrb[2].mxu0  ;;  %v276_v44 = vpop.f32.mrb[2].mxu1 }
 0x11e   :  { %v161_v36 = vadd.f32 %v774_v31, %v160_v35  ;;  %v907_v37 = vpop.f32.mrb[3].mxu0  ;;  %v164_v38 = vmax.f32 %v158_v33, 0.0  ;;  %v927_v45 = vpop.f32.mrb[3].mxu1  ;;  %v277_v2 = vadd.f32 %v785_v54, %v276_v44 }
 0x120   :  { %v165_v39 = vmax.f32 %v161_v36, 0.0 }
 0x122   :  { %v280_v40 = vpack.c.bf16 %v165_v39, %v164_v38 }
 0x124   :  { %945 = vmatmul.mubr.bf16.vlgmr.msra.gmra.mrb[4].mxu0 %v280_v40 }
 0x125   :  { %984 = vmatprep.mubr.msk.bf16.mxu0 %vm1143_vm0, %v1142_v0  ;;  %969 = vmatpush3.bf16.msra.mxu0 %v1050_v48 }
 0x126   :  { %970 = vmatprep.subr.bf16.mxu0 %v1142_v0 }
 0x129   :  { %971 = vmatpush3.bf16.msra.mxu0 %v1051_v49 }
 0x12a   :  { %972 = vmatprep.subr.bf16.mxu0 %v1142_v0 }
 0x12d   :  { %973 = vmatpush3.bf16.msra.mxu0 %v1052_v50 }
 0x12e   :  { %974 = vmatprep.subr.bf16.mxu0 %v1142_v0 }
 0x131   :  { %975 = vmatpush3.bf16.msra.mxu0 %v1053_v51 }
 0x132   :  { %976 = vmatprep.subr.bf16.mxu0 %v1142_v0 }
 0x135   :  { %977 = vmatpush3.bf16.msra.mxu0 %v1054_v52 }
 0x136   :  { %978 = vmatprep.subr.bf16.mxu0 %v1142_v0 }
 0x139   :  { %979 = vmatpush3.bf16.msra.mxu0 %v1055_v53 }
 0x13a   :  { %980 = vmatprep.subr.bf16.mxu0 %v1142_v0 }
 0x13d   :  { %981 = vmatpush3.bf16.msra.mxu0 %v1056_v8 }
 0x13e   :  { %982 = vmatprep.subr.bf16.mxu0 %v1142_v0 }
 0x141   :  { %983 = vmatpush3.bf16.msra.mxu0 %v1057_v9 }
 0x1f7   :  { %v388_v56 = vpop.f32.mrb[4].mxu0 }
 0x1f8   :  { %v389_v58 = vadd.f32 %v795_v55, %v388_v56  ;;  %v946_v59 = vpop.f32.mrb[5].mxu0 }
 0x1f9   :  { %v391_v60 = vpop.f32.mrb[6].mxu0 }
 0x1fa   :  { %v395_v61 = vmax.f32 %v389_v58, 0.0  ;;  %v392_v62 = vadd.f32 %v795_v55, %v391_v60  ;;  %v947_v63 = vpop.f32.mrb[7].mxu0 }
 0x1fc   :  { %v397_v1 = vadd.f32 %v395_v61, %v274_v57  ;;  %v396_v3 = vmax.f32 %v392_v62, 0.0 }
 0x1fe   :  { %v398_v4 = vadd.f32 %v396_v3, %v277_v2  ;;  %v399_v5 = vmax.f32 %v397_v1, 0.0 }
 0x200   :  { %v400_v6 = vmax.f32 %v398_v4, 0.0 }
 0x202   :  { %v401_v7 = vpack.c.bf16 %v400_v6, %v399_v5 }
 0x204   :  { %965 = vmatmul.mubr.bf16.vlgmr.msra.gmra.mrb[4].mxu1 %v401_v7 }
 0x205   :  { %1004 = vmatprep.mubr.msk.bf16.mxu1 %vm1143_vm0, %v1142_v0  ;;  %989 = vmatpush3.bf16.msra.mxu1 %v1058_v10 }
 0x206   :  { %990 = vmatprep.subr.bf16.mxu1 %v1142_v0 }
 0x209   :  { %991 = vmatpush3.bf16.msra.mxu1 %v1059_v11 }
 0x20a   :  { %992 = vmatprep.subr.bf16.mxu1 %v1142_v0 }
 0x20d   :  { %993 = vmatpush3.bf16.msra.mxu1 %v1060_v12 }
 0x20e   :  { %994 = vmatprep.subr.bf16.mxu1 %v1142_v0 }
 0x211   :  { %995 = vmatpush3.bf16.msra.mxu1 %v1061_v13 }
 0x212   :  { %996 = vmatprep.subr.bf16.mxu1 %v1142_v0 }
 0x215   :  { %997 = vmatpush3.bf16.msra.mxu1 %v1062_v14 }
 0x216   :  { %998 = vmatprep.subr.bf16.mxu1 %v1142_v0 }
 0x219   :  { %999 = vmatpush3.bf16.msra.mxu1 %v1063_v25 }
 0x21a   :  { %1000 = vmatprep.subr.bf16.mxu1 %v1142_v0 }
 0x21d   :  { %1001 = vmatpush3.bf16.msra.mxu1 %v1064_v26 }
 0x21e   :  { %1002 = vmatprep.subr.bf16.mxu1 %v1142_v0  ;;  %v825_v0 = vld [vmem:[%s1283_s2 + $0x5] ss:$0 sm:$0xff] }
 0x221   :  { %1003 = vmatpush3.bf16.msra.mxu1 %v1065_v27 }
 0x2d7   :  { %v509_v16 = vpop.f32.mrb[4].mxu1 }
 0x2d8   :  { %v510_v17 = vadd.f32 %v805_v15, %v509_v16  ;;  %v966_v18 = vpop.f32.mrb[5].mxu1 }
 0x2d9   :  { %v512_v19 = vpop.f32.mrb[6].mxu1 }
 0x2da   :  { %v513_v20 = vadd.f32 %v805_v15, %v512_v19  ;;  %v967_v21 = vpop.f32.mrb[7].mxu1  ;;  %v516_v22 = vmax.f32 %v510_v17, 0.0 }
 0x2dc   :  { %v517_v23 = vmax.f32 %v513_v20, 0.0 }
 0x2de   :  { %v518_v24 = vpack.c.bf16 %v517_v23, %v516_v22 }
 0x2e0   :  { %985 = vmatmul.mubr.bf16.vlgmr.msra.gmra.mrb[8].mxu0 %v518_v24 }
 0x3b3   :  { %v626_v29 = vpop.f32.mrb[8].mxu0 }
 0x3b4   :  { %v627_v30 = vadd.f32 %v815_v28, %v626_v29  ;;  %v986_v31 = vpop.f32.mrb[9].mxu0 }
 0x3b5   :  { %v629_v32 = vpop.f32.mrb[10].mxu0 }
 0x3b6   :  { %v633_v33 = vmax.f32 %v627_v30, 0.0  ;;  %v630_v34 = vadd.f32 %v815_v28, %v629_v32  ;;  %v987_v35 = vpop.f32.mrb[11].mxu0 }
 0x3b8   :  { %v635_v36 = vadd.f32 %v633_v33, %v399_v5  ;;  %v634_v37 = vmax.f32 %v630_v34, 0.0 }
 0x3ba   :  { %v636_v38 = vadd.f32 %v634_v37, %v400_v6  ;;  %v637_v39 = vmax.f32 %v635_v36, 0.0 }
 0x3bc   :  { %v638_v40 = vmax.f32 %v636_v38, 0.0 }
 0x3be   :  { %v639_v41 = vpack.c.bf16 %v638_v40, %v637_v39 }
 0x3c0   :  { %1005 = vmatmul.mubr.bf16.vlgmr.msra.gmra.mrb[8].mxu1 %v639_v41 }
 0x493   :  { %v747_v42 = vpop.f32.mrb[8].mxu1 }
 0x494   :  { %v748_v43 = vadd.f32 %v825_v0, %v747_v42  ;;  %v1006_v44 = vpop.f32.mrb[9].mxu1 }
 0x495   :  { %v750_v45 = vpop.f32.mrb[10].mxu1 }
 0x496   :  { %754 = vst [vmem:[#allocation7] sm:$0xff] %v748_v43  ;;  %v751_v46 = vadd.f32 %v825_v0, %v750_v45  ;;  %v1007_v47 = vpop.f32.mrb[11].mxu1 }
 0x498   :  { %755 = vst [vmem:[#allocation7 + $0x8] sm:$0xff] %v751_v46 }
 0x499   :  { %1121 = shalt.err (!%p1118_p6)
}
 0x49a   :  { %s1122_s25 = scalar_lea.hbm %s1284_s3, 256 }
 0x49b   :  { %p1123_p7 = scmp.ne.s32.totalorder %s1284_s3, %s1122_s25  ;;  %p1126_p8 = scmp.lt.u32.totalorder %s1122_s25, %s1284_s3 }
 0x49d   :  { %p1128_p9 = pnand %p1126_p8, %p1123_p7 }
 0x49f   :  { %1131 = shalt.err (!%p1128_p9)
}
 0x4a0   :  { %s1145_s30 = smov 128   ;;  %s1146_s4 = smov 8  }
 0x4a1   :  { %767 = dma.vmem_to_hbm [thread:$0]  %s762_s22, 256, %s1284_s3, [#allocation4], %s1145_s30, %s1145_s30, %s1146_s4  }
 0x4a2   :  { %1136 = dma.done.wait [#allocation4], 256  }
 0x4a3   :  { %1137 = vsyncadd [#allocation4], 4294967040 }
 0x4a4   :  { %771 = vsyncpa [#allocation3], 1 }
 0x4a5   :  { %772 = vsyncpa [#allocation6], 1 }
 0x4a6   :  { %773 = vsyncpa [#allocation4], 1 }

// kernel: tpu_custom_call.1
= control target key start
LH: loop header
LB: loop body
LE: loop exit
PB: predicated region body
PF: predicated region fallthrough
CT: control target
= control target key end

     0   :  { %8 = vsyncpa [#allocation3], 0  ;;  %s1281_s0 = inlined_call_operand.hbm [shape: bf16[16,128], index: 0, kind: input, shape index: {}]   ;;  %s1282_s1 = inlined_call_operand.hbm [shape: bf16[6,128,128], index: 1, kind: input, shape index: {}]   ;;  %s1283_s2 = inlined_call_operand.vmem [shape: f32[6,1,128], index: 2, kind: input, shape index: {}]   ;;  %s1284_s3 = inlined_call_operand.hbm [shape: f32[16,128], index: 3, kind: output, shape index: {}]  }
   0x1   :  { %9 = vsyncpa [#allocation6], 0 }
   0x2   :  { %10 = vsyncpa [#allocation4], 0  ;;  %s1138_s12 = smov [#allocation2]   ;;  %s1066_s16 = scalar_lea.hbm %s1281_s0, 128 }
   0x3   :  { %s16_s13 = sshll.u32 %s1138_s12, 4  ;;  %p1067_p0 = scmp.ne.s32.totalorder %s1281_s0, %s1066_s16  ;;  %s17_s13 = int_to_ptr.vmem [resolvable:$true] %s16_s13 }
   0x4   :  { %p1070_p1 = scmp.lt.u32.totalorder %s1066_s16, %s1281_s0 }
   0x6   :  { %p1072_p2 = pnand %p1070_p1, %p1067_p0 }
   0x8   :  { %1075 = shalt.err (!%p1072_p2)
}
   0x9   :  { %s1076_s21 = scalar_lea.vmem %s17_s13, 128  ;;  %p1081_p4 = scmp.lt.s32.totalorder %s17_s13, %s17_s13 }
   0xa   :  { %p1077_p3 = scmp.ne.s32.totalorder %s17_s13, %s1076_s21  ;;  %p1082_p5 = scmp.lt.s32.totalorder %s1076_s21, %s1076_s21 }
   0xc   :  { %p1083_p6 = por %p1082_p5, %p1081_p4 }
   0xe   :  { %p1084_p7 = pnand %p1083_p6, %p1077_p3 }
  0x10   :  { %1087 = shalt.err (!%p1084_p7)
}
  0x11   :  { %s1139_s22 = smov 64   ;;  %s1140_s23 = smov 4  }
  0x12   :  { %22 = dma.hbm_to_vmem [thread:$0]  %s1281_s0, 128, %s17_s13, [#allocation3], %s1139_s22, %s1139_s22, %s1140_s23  }
  0x13   :  { %s1141_s26 = smov [#allocation5]   ;;  %s1088_s30 = scalar_lea.hbm %s1282_s1, 6144 }
  0x14   :  { %s28_s27 = sshll.u32 %s1141_s26, 4  ;;  %p1089_p8 = scmp.ne.s32.totalorder %s1282_s1, %s1088_s30  ;;  %s29_s27 = int_to_ptr.vmem [resolvable:$true] %s28_s27 }
  0x15   :  { %p1092_p9 = scmp.lt.u32.totalorder %s1088_s30, %s1282_s1 }
  0x17   :  { %p1094_p10 = pnand %p1092_p9, %p1089_p8 }
  0x19   :  { %1097 = shalt.err (!%p1094_p10)
}
  0x1a   :  { %s1098_s8 = scalar_lea.vmem %s29_s27, 6144  ;;  %p1103_p12 = scmp.lt.s32.totalorder %s29_s27, %s29_s27 }
  0x1b   :  { %p1099_p11 = scmp.ne.s32.totalorder %s29_s27, %s1098_s8  ;;  %p1104_p13 = scmp.lt.s32.totalorder %s1098_s8, %s1098_s8 }
  0x1d   :  { %p1105_p0 = por %p1104_p13, %p1103_p12 }
  0x1f   :  { %p1106_p1 = pnand %p1105_p0, %p1099_p11 }
  0x21   :  { %1109 = shalt.err (!%p1106_p1)
}
  0x22   :  { %34 = dma.hbm_to_vmem [thread:$0]  %s1282_s1, 6144, %s29_s27, [#allocation6], %s1139_s22, %s1139_s22, %s1140_s23  }
  0x23   :  { %1132 = dma.done.wait [#allocation3], 128  }
  0x24   :  { %1133 = vsyncadd [#allocation3], 4294967168 }
  0x25   :  { %1134 = dma.done.wait [#allocation6], 6144  }
  0x26   :  { %1135 = vsyncadd [#allocation6], 4294961152  ;;  %v1142_v0 = vmov 0.0   ;;  %vm1143_vm0 = vmmov 0   ;;  %v1017_v1 = vld [vmem:[#allocation5] sm:$0xff]   ;;  %v1018_v2 = vld [vmem:[#allocation5 + $0x8] sm:$0xff]  }
  0x27   :  { %888 = vmatprep.subr.bf16.mxu0 %v1142_v0  ;;  %904 = vmatprep.mubr.msk.bf16.mxu0 %vm1143_vm0, %v1142_v0  ;;  %v1019_v3 = vld [vmem:[#allocation5 + $0x10] sm:$0xff]   ;;  %v1026_v4 = vld [vmem:[#allocation5 + $0x40] sm:$0xff]   ;;  %v1020_v5 = vld [vmem:[#allocation5 + $0x18] sm:$0xff]   ;;  %s1144_s21 = smov [#allocation7]  }
  0x28   :  { %908 = vmatprep.subr.bf16.mxu1 %v1142_v0  ;;  %924 = vmatprep.mubr.msk.bf16.mxu1 %vm1143_vm0, %v1142_v0  ;;  %v1028_v6 = vld [vmem:[#allocation5 + $0x48] sm:$0xff]   ;;  %v1021_v7 = vld [vmem:[#allocation5 + $0x20] sm:$0xff]   ;;  %v1030_v8 = vld [vmem:[#allocation5 + $0x50] sm:$0xff]   ;;  %s761_s22 = sshll.u32 %s1144_s21, 4  ;;  %s762_s22 = int_to_ptr.vmem [resolvable:$true] %s761_s22 }
  0x29   :  { %889 = vmatpush3.bf16.msra.mxu0 %v1017_v1  ;;  %909 = vmatpush3.bf16.msra.mxu1 %v1026_v4  ;;  %v1022_v9 = vld [vmem:[#allocation5 + $0x28] sm:$0xff]   ;;  %v1032_v10 = vld [vmem:[#allocation5 + $0x58] sm:$0xff]   ;;  %v1023_v11 = vld [vmem:[#allocation5 + $0x30] sm:$0xff]   ;;  %s1110_s23 = scalar_lea.vmem %s762_s22, 256  ;;  %p1115_p3 = scmp.lt.s32.totalorder %s762_s22, %s762_s22 }
  0x2a   :  { %890 = vmatprep.subr.bf16.mxu0 %v1142_v0  ;;  %910 = vmatprep.subr.bf16.mxu1 %v1142_v0  ;;  %v1034_v12 = vld [vmem:[#allocation5 + $0x60] sm:$0xff]   ;;  %v1024_v13 = vld [vmem:[#allocation5 + $0x38] sm:$0xff]   ;;  %v1036_v14 = vld [vmem:[#allocation5 + $0x68] sm:$0xff]   ;;  %p1111_p2 = scmp.ne.s32.totalorder %s762_s22, %s1110_s23  ;;  %p1116_p4 = scmp.lt.s32.totalorder %s1110_s23, %s1110_s23 }
  0x2b   :  { %v1025_v15 = vld [vmem:[#allocation2] sm:$0xff]   ;;  %v1027_v16 = vld [vmem:[#allocation5 + $0x80] sm:$0xff]   ;;  %v1029_v17 = vld [vmem:[#allocation5 + $0x88] sm:$0xff]  }
  0x2c   :  { %v1031_v18 = vld [vmem:[#allocation5 + $0x90] sm:$0xff]   ;;  %v1033_v19 = vld [vmem:[#allocation5 + $0x98] sm:$0xff]   ;;  %v1035_v20 = vld [vmem:[#allocation5 + $0xa0] sm:$0xff]   ;;  %p1117_p5 = por %p1116_p4, %p1115_p3 }
  0x2d   :  { %891 = vmatpush3.bf16.msra.mxu0 %v1018_v2  ;;  %911 = vmatpush3.bf16.msra.mxu1 %v1028_v6  ;;  %v1037_v21 = vld [vmem:[#allocation5 + $0xa8] sm:$0xff]   ;;  %v1038_v22 = vld [vmem:[#allocation5 + $0x70] sm:$0xff]   ;;  %v1040_v24 = vld [vmem:[#allocation5 + $0x78] sm:$0xff]  }
  0x2e   :  { %892 = vmatprep.subr.bf16.mxu0 %v1142_v0  ;;  %912 = vmatprep.subr.bf16.mxu1 %v1142_v0  ;;  %v1039_v23 = vld [vmem:[#allocation5 + $0xb0] sm:$0xff]   ;;  %v1041_v25 = vld [vmem:[#allocation5 + $0xb8] sm:$0xff]   ;;  %v1042_v26 = vld [vmem:[#allocation5 + $0xc0] sm:$0xff]   ;;  %p1118_p6 = pnand %p1117_p5, %p1111_p2 }
  0x2f   :  { %v1043_v27 = vld [vmem:[#allocation5 + $0xc8] sm:$0xff]   ;;  %v1044_v28 = vld [vmem:[#allocation5 + $0xd0] sm:$0xff]   ;;  %v1045_v29 = vld [vmem:[#allocation5 + $0xd8] sm:$0xff]  }
  0x30   :  { %v1046_v30 = vld [vmem:[#allocation5 + $0xe0] sm:$0xff]   ;;  %v774_v31 = vld [vmem:[%s1283_s2] ss:$0 sm:$0xff]  ;;  %v1047_v43 = vld [vmem:[#allocation5 + $0xe8] sm:$0xff]  }
  0x31   :  { %893 = vmatpush3.bf16.msra.mxu0 %v1019_v3  ;;  %913 = vmatpush3.bf16.msra.mxu1 %v1030_v8  ;;  %v1048_v46 = vld [vmem:[#allocation5 + $0xf0] sm:$0xff]   ;;  %v1049_v47 = vld [vmem:[#allocation5 + $0xf8] sm:$0xff]   ;;  %v1050_v48 = vld [vmem:[#allocation5 + $0x100] sm:$0xff]  }
  0x32   :  { %894 = vmatprep.subr.bf16.mxu0 %v1142_v0  ;;  %914 = vmatprep.subr.bf16.mxu1 %v1142_v0  ;;  %v1051_v49 = vld [vmem:[#allocation5 + $0x108] sm:$0xff]   ;;  %v1052_v50 = vld [vmem:[#allocation5 + $0x110] sm:$0xff]   ;;  %v1053_v51 = vld [vmem:[#allocation5 + $0x118] sm:$0xff]  }
  0x33   :  { %v1054_v52 = vld [vmem:[#allocation5 + $0x120] sm:$0xff]   ;;  %v1055_v53 = vld [vmem:[#allocation5 + $0x128] sm:$0xff]   ;;  %v785_v54 = vld [vmem:[%s1283_s2 + $0x1] ss:$0 sm:$0xff] }
  0x34   :  { %v795_v55 = vld [vmem:[%s1283_s2 + $0x2] ss:$0 sm:$0xff]  ;;  %v1056_v8 = vld [vmem:[#allocation5 + $0x130] sm:$0xff]  }
  0x35   :  { %895 = vmatpush3.bf16.msra.mxu0 %v1020_v5  ;;  %915 = vmatpush3.bf16.msra.mxu1 %v1032_v10  ;;  %v1058_v10 = vld [vmem:[#allocation5 + $0x140] sm:$0xff]  }
  0x36   :  { %896 = vmatprep.subr.bf16.mxu0 %v1142_v0  ;;  %916 = vmatprep.subr.bf16.mxu1 %v1142_v0 }
  0x39   :  { %897 = vmatpush3.bf16.msra.mxu0 %v1021_v7  ;;  %917 = vmatpush3.bf16.msra.mxu1 %v1034_v12  ;;  %v1060_v12 = vld [vmem:[#allocation5 + $0x150] sm:$0xff]  }
  0x3a   :  { %898 = vmatprep.subr.bf16.mxu0 %v1142_v0  ;;  %918 = vmatprep.subr.bf16.mxu1 %v1142_v0 }
  0x3d   :  { %899 = vmatpush3.bf16.msra.mxu0 %v1022_v9  ;;  %919 = vmatpush3.bf16.msra.mxu1 %v1036_v14  ;;  %v1057_v9 = vld [vmem:[#allocation5 + $0x138] sm:$0xff]   ;;  %v1062_v14 = vld [vmem:[#allocation5 + $0x160] sm:$0xff]  }
  0x3e   :  { %900 = vmatprep.subr.bf16.mxu0 %v1142_v0  ;;  %920 = vmatprep.subr.bf16.mxu1 %v1142_v0 }
  0x41   :  { %901 = vmatpush3.bf16.msra.mxu0 %v1023_v11  ;;  %921 = vmatpush3.bf16.msra.mxu1 %v1038_v22  ;;  %v1059_v11 = vld [vmem:[#allocation5 + $0x148] sm:$0xff]  }
  0x42   :  { %902 = vmatprep.subr.bf16.mxu0 %v1142_v0  ;;  %922 = vmatprep.subr.bf16.mxu1 %v1142_v0 }
  0x45   :  { %903 = vmatpush3.bf16.msra.mxu0 %v1024_v13  ;;  %923 = vmatpush3.bf16.msra.mxu1 %v1040_v24  ;;  %v1061_v13 = vld [vmem:[#allocation5 + $0x158] sm:$0xff]  }
  0x46   :  { %928 = vmatprep.subr.bf16.mxu0 %v1142_v0  ;;  %948 = vmatprep.subr.bf16.mxu1 %v1142_v0 }
  0x48   :  { %905 = vmatmul.mubr.bf16.vlgmr.msra.gmra.mrb[0].mxu0 %v1025_v15  ;;  %925 = vmatmul.mubr.bf16.vlgmr.msra.gmra.mrb[0].mxu1 %v1025_v15  ;;  %v805_v15 = vld [vmem:[%s1283_s2 + $0x3] ss:$0 sm:$0xff] }
  0x49   :  { %929 = vmatpush3.bf16.msra.mxu0 %v1027_v16  ;;  %944 = vmatprep.mubr.msk.bf16.mxu0 %vm1143_vm0, %v1142_v0 }
  0x4a   :  { %930 = vmatprep.subr.bf16.mxu0 %v1142_v0  ;;  %964 = vmatprep.mubr.msk.bf16.mxu1 %vm1143_vm0, %v1142_v0 }
  0x4b   :  { %949 = vmatpush3.bf16.msra.mxu1 %v1042_v26  ;;  %v1064_v26 = vld [vmem:[#allocation5 + $0x170] sm:$0xff]  }
  0x4c   :  { %950 = vmatprep.subr.bf16.mxu1 %v1142_v0 }
  0x4d   :  { %931 = vmatpush3.bf16.msra.mxu0 %v1029_v17 }
  0x4e   :  { %932 = vmatprep.subr.bf16.mxu0 %v1142_v0 }
  0x4f   :  { %951 = vmatpush3.bf16.msra.mxu1 %v1043_v27  ;;  %v1065_v27 = vld [vmem:[#allocation5 + $0x178] sm:$0xff]  }
  0x50   :  { %952 = vmatprep.subr.bf16.mxu1 %v1142_v0 }
  0x51   :  { %933 = vmatpush3.bf16.msra.mxu0 %v1031_v18 }
  0x52   :  { %934 = vmatprep.subr.bf16.mxu0 %v1142_v0 }
  0x53   :  { %953 = vmatpush3.bf16.msra.mxu1 %v1044_v28  ;;  %v815_v28 = vld [vmem:[%s1283_s2 + $0x4] ss:$0 sm:$0xff] }
  0x54   :  { %954 = vmatprep.subr.bf16.mxu1 %v1142_v0 }
  0x55   :  { %935 = vmatpush3.bf16.msra.mxu0 %v1033_v19 }
  0x56   :  { %936 = vmatprep.subr.bf16.mxu0 %v1142_v0 }
  0x57   :  { %955 = vmatpush3.bf16.msra.mxu1 %v1045_v29 }
  0x58   :  { %956 = vmatprep.subr.bf16.mxu1 %v1142_v0 }
  0x59   :  { %937 = vmatpush3.bf16.msra.mxu0 %v1035_v20 }
  0x5a   :  { %938 = vmatprep.subr.bf16.mxu0 %v1142_v0 }
  0x5b   :  { %957 = vmatpush3.bf16.msra.mxu1 %v1046_v30 }
  0x5c   :  { %958 = vmatprep.subr.bf16.mxu1 %v1142_v0 }
  0x5d   :  { %939 = vmatpush3.bf16.msra.mxu0 %v1037_v21 }
  0x5e   :  { %940 = vmatprep.subr.bf16.mxu0 %v1142_v0 }
  0x5f   :  { %959 = vmatpush3.bf16.msra.mxu1 %v1047_v43 }
  0x60   :  { %960 = vmatprep.subr.bf16.mxu1 %v1142_v0 }
  0x61   :  { %941 = vmatpush3.bf16.msra.mxu0 %v1039_v23 }
  0x62   :  { %942 = vmatprep.subr.bf16.mxu0 %v1142_v0 }
  0x63   :  { %961 = vmatpush3.bf16.msra.mxu1 %v1048_v46 }
  0x64   :  { %962 = vmatprep.subr.bf16.mxu1 %v1142_v0 }
  0x65   :  { %943 = vmatpush3.bf16.msra.mxu0 %v1041_v25  ;;  %v1063_v25 = vld [vmem:[#allocation5 + $0x168] sm:$0xff]  }
  0x66   :  { %968 = vmatprep.subr.bf16.mxu0 %v1142_v0 }
  0x67   :  { %963 = vmatpush3.bf16.msra.mxu1 %v1049_v47 }
  0x68   :  { %988 = vmatprep.subr.bf16.mxu1 %v1142_v0 }
 0x11b   :  { %v157_v32 = vpop.f32.mrb[0].mxu0  ;;  %v273_v41 = vpop.f32.mrb[0].mxu1 }
 0x11c   :  { %v158_v33 = vadd.f32 %v774_v31, %v157_v32  ;;  %v906_v34 = vpop.f32.mrb[1].mxu0  ;;  %v926_v42 = vpop.f32.mrb[1].mxu1  ;;  %v274_v57 = vadd.f32 %v785_v54, %v273_v41 }
 0x11d   :  { %v160_v35 = vpop.f32.mrb[2].mxu0  ;;  %v276_v44 = vpop.f32.mrb[2].mxu1 }
 0x11e   :  { %v161_v36 = vadd.f32 %v774_v31, %v160_v35  ;;  %v907_v37 = vpop.f32.mrb[3].mxu0  ;;  %v164_v38 = vmax.f32 %v158_v33, 0.0  ;;  %v927_v45 = vpop.f32.mrb[3].mxu1  ;;  %v277_v2 = vadd.f32 %v785_v54, %v276_v44 }
 0x120   :  { %v165_v39 = vmax.f32 %v161_v36, 0.0 }
 0x122   :  { %v280_v40 = vpack.c.bf16 %v165_v39, %v164_v38 }
 0x124   :  { %945 = vmatmul.mubr.bf16.vlgmr.msra.gmra.mrb[4].mxu0 %v280_v40 }
 0x125   :  { %984 = vmatprep.mubr.msk.bf16.mxu0 %vm1143_vm0, %v1142_v0  ;;  %969 = vmatpush3.bf16.msra.mxu0 %v1050_v48 }
 0x126   :  { %970 = vmatprep.subr.bf16.mxu0 %v1142_v0 }
 0x129   :  { %971 = vmatpush3.bf16.msra.mxu0 %v1051_v49 }
 0x12a   :  { %972 = vmatprep.subr.bf16.mxu0 %v1142_v0 }
 0x12d   :  { %973 = vmatpush3.bf16.msra.mxu0 %v1052_v50 }
 0x12e   :  { %974 = vmatprep.subr.bf16.mxu0 %v1142_v0 }
 0x131   :  { %975 = vmatpush3.bf16.msra.mxu0 %v1053_v51 }
 0x132   :  { %976 = vmatprep.subr.bf16.mxu0 %v1142_v0 }
 0x135   :  { %977 = vmatpush3.bf16.msra.mxu0 %v1054_v52 }
 0x136   :  { %978 = vmatprep.subr.bf16.mxu0 %v1142_v0 }
 0x139   :  { %979 = vmatpush3.bf16.msra.mxu0 %v1055_v53 }
 0x13a   :  { %980 = vmatprep.subr.bf16.mxu0 %v1142_v0 }
 0x13d   :  { %981 = vmatpush3.bf16.msra.mxu0 %v1056_v8 }
 0x13e   :  { %982 = vmatprep.subr.bf16.mxu0 %v1142_v0 }
 0x141   :  { %983 = vmatpush3.bf16.msra.mxu0 %v1057_v9 }
 0x1f7   :  { %v388_v56 = vpop.f32.mrb[4].mxu0 }
 0x1f8   :  { %v389_v58 = vadd.f32 %v795_v55, %v388_v56  ;;  %v946_v59 = vpop.f32.mrb[5].mxu0 }
 0x1f9   :  { %v391_v60 = vpop.f32.mrb[6].mxu0 }
 0x1fa   :  { %v395_v61 = vmax.f32 %v389_v58, 0.0  ;;  %v392_v62 = vadd.f32 %v795_v55, %v391_v60  ;;  %v947_v63 = vpop.f32.mrb[7].mxu0 }
 0x1fc   :  { %v397_v1 = vadd.f32 %v395_v61, %v274_v57  ;;  %v396_v3 = vmax.f32 %v392_v62, 0.0 }
 0x1fe   :  { %v398_v4 = vadd.f32 %v396_v3, %v277_v2  ;;  %v399_v5 = vmax.f32 %v397_v1, 0.0 }
 0x200   :  { %v400_v6 = vmax.f32 %v398_v4, 0.0 }
 0x202   :  { %v401_v7 = vpack.c.bf16 %v400_v6, %v399_v5 }
 0x204   :  { %965 = vmatmul.mubr.bf16.vlgmr.msra.gmra.mrb[4].mxu1 %v401_v7 }
 0x205   :  { %1004 = vmatprep.mubr.msk.bf16.mxu1 %vm1143_vm0, %v1142_v0  ;;  %989 = vmatpush3.bf16.msra.mxu1 %v1058_v10 }
 0x206   :  { %990 = vmatprep.subr.bf16.mxu1 %v1142_v0 }
 0x209   :  { %991 = vmatpush3.bf16.msra.mxu1 %v1059_v11 }
 0x20a   :  { %992 = vmatprep.subr.bf16.mxu1 %v1142_v0 }
 0x20d   :  { %993 = vmatpush3.bf16.msra.mxu1 %v1060_v12 }
 0x20e   :  { %994 = vmatprep.subr.bf16.mxu1 %v1142_v0 }
 0x211   :  { %995 = vmatpush3.bf16.msra.mxu1 %v1061_v13 }
 0x212   :  { %996 = vmatprep.subr.bf16.mxu1 %v1142_v0 }
 0x215   :  { %997 = vmatpush3.bf16.msra.mxu1 %v1062_v14 }
 0x216   :  { %998 = vmatprep.subr.bf16.mxu1 %v1142_v0 }
 0x219   :  { %999 = vmatpush3.bf16.msra.mxu1 %v1063_v25 }
 0x21a   :  { %1000 = vmatprep.subr.bf16.mxu1 %v1142_v0 }
 0x21d   :  { %1001 = vmatpush3.bf16.msra.mxu1 %v1064_v26 }
 0x21e   :  { %1002 = vmatprep.subr.bf16.mxu1 %v1142_v0  ;;  %v825_v0 = vld [vmem:[%s1283_s2 + $0x5] ss:$0 sm:$0xff] }
 0x221   :  { %1003 = vmatpush3.bf16.msra.mxu1 %v1065_v27 }
 0x2d7   :  { %v509_v16 = vpop.f32.mrb[4].mxu1 }
 0x2d8   :  { %v510_v17 = vadd.f32 %v805_v15, %v509_v16  ;;  %v966_v18 = vpop.f32.mrb[5].mxu1 }
 0x2d9   :  { %v512_v19 = vpop.f32.mrb[6].mxu1 }
 0x2da   :  { %v513_v20 = vadd.f32 %v805_v15, %v512_v19  ;;  %v967_v21 = vpop.f32.mrb[7].mxu1  ;;  %v516_v22 = vmax.f32 %v510_v17, 0.0 }
 0x2dc   :  { %v517_v23 = vmax.f32 %v513_v20, 0.0 }
 0x2de   :  { %v518_v24 = vpack.c.bf16 %v517_v23, %v516_v22 }
 0x2e0   :  { %985 = vmatmul.mubr.bf16.vlgmr.msra.gmra.mrb[8].mxu0 %v518_v24 }
 0x3b3   :  { %v626_v29 = vpop.f32.mrb[8].mxu0 }
 0x3b4   :  { %v627_v30 = vadd.f32 %v815_v28, %v626_v29  ;;  %v986_v31 = vpop.f32.mrb[9].mxu0 }
 0x3b5   :  { %v629_v32 = vpop.f32.mrb[10].mxu0 }
 0x3b6   :  { %v633_v33 = vmax.f32 %v627_v30, 0.0  ;;  %v630_v34 = vadd.f32 %v815_v28, %v629_v32  ;;  %v987_v35 = vpop.f32.mrb[11].mxu0 }
 0x3b8   :  { %v635_v36 = vadd.f32 %v633_v33, %v399_v5  ;;  %v634_v37 = vmax.f32 %v630_v34, 0.0 }
 0x3ba   :  { %v636_v38 = vadd.f32 %v634_v37, %v400_v6  ;;  %v637_v39 = vmax.f32 %v635_v36, 0.0 }
 0x3bc   :  { %v638_v40 = vmax.f32 %v636_v38, 0.0 }
 0x3be   :  { %v639_v41 = vpack.c.bf16 %v638_v40, %v637_v39 }
 0x3c0   :  { %1005 = vmatmul.mubr.bf16.vlgmr.msra.gmra.mrb[8].mxu1 %v639_v41 }
 0x493   :  { %v747_v42 = vpop.f32.mrb[8].mxu1 }
 0x494   :  { %v748_v43 = vadd.f32 %v825_v0, %v747_v42  ;;  %v1006_v44 = vpop.f32.mrb[9].mxu1 }
 0x495   :  { %v750_v45 = vpop.f32.mrb[10].mxu1 }
 0x496   :  { %754 = vst [vmem:[#allocation7] sm:$0xff] %v748_v43  ;;  %v751_v46 = vadd.f32 %v825_v0, %v750_v45  ;;  %v1007_v47 = vpop.f32.mrb[11].mxu1 }
 0x498   :  { %755 = vst [vmem:[#allocation7 + $0x8] sm:$0xff] %v751_v46 }
 0x499   :  { %1121 = shalt.err (!%p1118_p6)
}
 0x49a   :  { %s1122_s25 = scalar_lea.hbm %s1284_s3, 256 }
 0x49b   :  { %p1123_p7 = scmp.ne.s32.totalorder %s1284_s3, %s1122_s25  ;;  %p1126_p8 = scmp.lt.u32.totalorder %s1122_s25, %s1284_s3 }
 0x49d   :  { %p1128_p9 = pnand %p1126_p8, %p1123_p7 }
 0x49f   :  { %1131 = shalt.err (!%p1128_p9)
}
 0x4a0   :  { %s1145_s30 = smov 128   ;;  %s1146_s4 = smov 8  }
 0x4a1   :  { %767 = dma.vmem_to_hbm [thread:$0]  %s762_s22, 256, %s1284_s3, [#allocation4], %s1145_s30, %s1145_s30, %s1146_s4  }
 0x4a2   :  { %1136 = dma.done.wait [#allocation4], 256  }
 0x4a3   :  { %1137 = vsyncadd [#allocation4], 4294967040 }
 0x4a4   :  { %771 = vsyncpa [#allocation3], 1 }
 0x4a5   :  { %772 = vsyncpa [#allocation6], 1 }
 0x4a6   :  { %773 = vsyncpa [#allocation4], 1 }

</bundles_post_ra>
